<compile_context>
chip_gen: v7x
topology: tpu7x:2x2x1
jax: 0.10.0
libtpu: 0.0.40
codegen_flags: <defaults>
</compile_context>

<pallas_src>
import math
import functools

import jax
import jax.numpy as jnp
from jax import lax
from jax.experimental import pallas as pl
from jax.experimental.pallas import tpu as pltpu


_VMEM_BUDGET_BYTES = 24 * 1024 * 1024   # double-buffered in+out+pe footprint target
_VMEM_LIMIT_BYTES = 32 * 1024 * 1024    # explicit scoped-VMEM limit, safe on v5e/v6e/v7x
_GOLDEN = 0x9E3779B9                    # 2^32/phi, odd -> bijective seed mix


# ----------------------------------------------------------------------------
# Parameter setup (equivalent of __init__): build the PE buffer deterministically
# ----------------------------------------------------------------------------
def make_positional_encoding(num_input: int, max_len: int = 5000) -> jnp.ndarray:
    """Returns pe of shape (max_len, 1, num_input), same as the torch buffer."""
    position = jnp.arange(0, max_len, dtype=jnp.float32)[:, None]          # (max_len, 1)
    denominator = jnp.exp(
        jnp.arange(0, num_input, 2, dtype=jnp.float32)
        * (-math.log(10000.0) / num_input)
    )                                                                       # (num_input//2,)
    pe = jnp.zeros((max_len, num_input), dtype=jnp.float32)
    pe = pe.at[:, 0::2].set(jnp.sin(position * denominator))
    pe = pe.at[:, 1::2].set(jnp.cos(position * denominator))
    return pe[:, None, :]                                                   # (max_len, 1, num_input)


# ----------------------------------------------------------------------------
# In-kernel PRNG: counter-based avalanche hash (lowbias32-style), pure VPU ops.
# TODO(synk): on real TPU pltpu.prng_random_bits would be cheaper, but it does
# not lower under interpret mode and the mask would not match torch's RNG
# stream either way.
# ----------------------------------------------------------------------------
def _hash_u32(x):
    x = x ^ (x >> 16)
    x = x * jnp.uint32(0x7FEB352D)
    x = x ^ (x >> 15)
    x = x * jnp.uint32(0x846CA68B)
    x = x ^ (x >> 16)
    return x


# ----------------------------------------------------------------------------
# Pallas kernels
# ----------------------------------------------------------------------------
def _pe_add_kernel(x_ref, pe_ref, o_ref, *, batch):
    pe = pe_ref[...]                                     # (ts, D), float32
    if x_ref.ndim == 3:
        # Contiguous (ts, B, D) block (B >= rows-per-vreg): broadcast PE over
        # the batch (sublane) axis. Add in f32, round only at the store.
        o_ref[...] = (x_ref[...].astype(jnp.float32) + pe[:, None, :]).astype(o_ref.dtype)
    else:
        # Flattened (ts*B, D) block (small B, sublane-dense): rows are ordered
        # (s0,b0),(s0,b1),...  Apply PE to each batch lane via a strided slice
        # (sublane stride = B); static unroll, batch is small here.
        ts = pe_ref.shape[0]
        for b in range(batch):
            rows = pl.ds(b, ts, stride=batch)
            o_ref[rows, :] = (x_ref[rows, :].astype(jnp.float32) + pe).astype(o_ref.dtype)


def _pe_add_dropout_kernel(seed_ref, x_ref, pe_ref, o_ref, *,
                           batch, keep_threshold, scale):
    # Training-mode inverted dropout. Keep decision = one u32 hash of the
    # global element index mixed with the seed, compared against an integer
    # threshold (P(keep) = 1 - floor(p*2^32)/2^32, bias <= 2^-32).
    # TODO(synk): deterministic per (seed, element) but does NOT reproduce
    # torch's RNG stream.
    pe = pe_ref[...]                                     # (ts, D), float32
    ts, d = pe_ref.shape
    seed = seed_ref[0].astype(jnp.uint32) * jnp.uint32(_GOLDEN)
    s_off = (pl.program_id(0) * ts).astype(jnp.uint32)
    scale_f = jnp.float32(scale)
    thresh = jnp.uint32(keep_threshold)

    def keep_mask(s_idx, b_idx, d_idx):
        ctr = (s_idx * jnp.uint32(batch) + b_idx) * jnp.uint32(d) + d_idx
        return _hash_u32(ctr ^ seed) >= thresh

    if x_ref.ndim == 3:                                  # (ts, B, D) block
        shape = x_ref.shape
        s_idx = lax.broadcasted_iota(jnp.int32, shape, 0).astype(jnp.uint32) + s_off
        b_idx = lax.broadcasted_iota(jnp.int32, shape, 1).astype(jnp.uint32)
        d_idx = lax.broadcasted_iota(jnp.int32, shape, 2).astype(jnp.uint32)
        keep = keep_mask(s_idx, b_idx, d_idx)
        y = x_ref[...].astype(jnp.float32) + pe[:, None, :]
        o_ref[...] = jnp.where(keep, y * scale_f, 0.0).astype(o_ref.dtype)
    else:                                                # (ts*B, D) flattened block
        shape = (ts, d)
        s_idx = lax.broadcasted_iota(jnp.int32, shape, 0).astype(jnp.uint32) + s_off
        d_idx = lax.broadcasted_iota(jnp.int32, shape, 1).astype(jnp.uint32)
        for b in range(batch):                           # static unroll, small batch
            rows = pl.ds(b, ts, stride=batch)
            keep = keep_mask(s_idx, jnp.uint32(b), d_idx)
            y = x_ref[rows, :].astype(jnp.float32) + pe
            o_ref[rows, :] = jnp.where(keep, y * scale_f, 0.0).astype(o_ref.dtype)


# ----------------------------------------------------------------------------
# Tile-size selection (sequence positions per grid step)
# ----------------------------------------------------------------------------
def _choose_tile_seq(S, B, D, itemsize, *,
                     budget_bytes=_VMEM_BUDGET_BYTES,
                     target_steps=8,
                     min_payload_bytes=2 * 1024 * 1024):
    """Keeps the double-buffered footprint (2*x_in + 2*out + 2*pe) under
    budget_bytes, keeps >= ~2 MiB of x traffic per grid step (amortizes the
    ~0.35us per-step overhead; matters most at v7x HBM speeds), and never lets
    the grid collapse to a single step when S can be split into legal
    (multiple-of-8) tiles."""
    if S <= 8:
        return S
    bytes_per_pos = 4 * B * D * itemsize + 2 * D * 4      # 2*x + 2*out + 2*pe(f32)
    ts_budget = max(1, budget_bytes // bytes_per_pos)
    payload_per_pos = max(1, 2 * B * D * itemsize)         # x-in + out per position
    ts_payload = -(-min_payload_bytes // payload_per_pos)
    ts_steps = -(-S // max(1, target_steps))
    ts = min(ts_budget, max(ts_steps, ts_payload))
    ts = min(ts, -(-S // 2))        # at least 2 grid steps along S
    ts = max(8, (ts // 8) * 8)      # (8,128) sublane legality for the (ts, D) PE block
    # TODO(synk): for extremely large B*D (minimum legal tile > VMEM budget)
    # the D axis would need tiling as well; not needed for typical PE shapes.
    return min(ts, S)


# ----------------------------------------------------------------------------
# Wrapper (forward pass)
# ----------------------------------------------------------------------------
def positional_encoding_forward(x, pe, *, p=0.1, training=False, seed=0):
    """x: (S, B, D); pe: (max_len, 1, D). Returns (S, B, D), dtype of x."""
    S, B, D = x.shape
    # Keep PE in f32 so the add runs in f32 and only the final store rounds to
    # x.dtype (HBM-bound op -> the extra VPU work is free; PE traffic is tiny).
    pe_s = pe[:S, 0, :].astype(jnp.float32)               # (S, D)
    itemsize = x.dtype.itemsize
    p = float(p)

    # Sublane rows per vreg for x.dtype: 8 (32-bit), 16 (16-bit), 32 (8-bit).
    rows_per_vreg = {4: 8, 2: 16, 1: 32}.get(itemsize, 8)
    # Small batch: flatten to (S*B, D) (zero-copy row-major collapse) so the
    # output stays sublane-dense instead of mostly-masked (B, D) minor tiles.
    flatten = B < rows_per_vreg

    ts = _choose_tile_seq(S, B, D, itemsize)
    grid = (pl.cdiv(S, ts),)
    cparams = pltpu.CompilerParams(dimension_semantics=("parallel",),
                                   vmem_limit_bytes=_VMEM_LIMIT_BYTES)
    cost = pl.CostEstimate(flops=S * B * D, transcendentals=0,
                           bytes_accessed=2 * S * B * D * itemsize + S * D * 4)

    if flatten:
        x_in = x.reshape(S * B, D)
        x_block = (ts * B, D)
        out_shape = jax.ShapeDtypeStruct((S * B, D), x.dtype)
        x_idx_e = lambda i: (i, 0)
        x_idx_t = lambda i, seed_ref: (i, 0)
    else:
        x_in = x
        x_block = (ts, B, D)
        out_shape = jax.ShapeDtypeStruct((S, B, D), x.dtype)
        x_idx_e = lambda i: (i, 0, 0)
        x_idx_t = lambda i, seed_ref: (i, 0, 0)
    pe_block = (ts, D)
    pe_idx_e = lambda i: (i, 0)
    pe_idx_t = lambda i, seed_ref: (i, 0)

    if (not training) or p <= 0.0:
        # Dropout is the identity in eval mode (or with p == 0).
        # TODO(synk): input_output_aliases could donate x's HBM buffer; left
        # off so callers can keep using x after the call.
        out = pl.pallas_call(
            functools.partial(_pe_add_kernel, batch=B),
            out_shape=out_shape,
            grid=grid,
            in_specs=[pl.BlockSpec(x_block, x_idx_e),
                      pl.BlockSpec(pe_block, pe_idx_e)],
            out_specs=pl.BlockSpec(x_block, x_idx_e),
            compiler_params=cparams,
            cost_estimate=cost,
        )(x_in, pe_s)
        return out.reshape(S, B, D) if flatten else out

    if p >= 1.0:
        # Everything is dropped; 1/(1-p) would be inf, so special-case.
        return jnp.zeros_like(x)

    keep_threshold = min(int(p * 4294967296.0), 4294967295)   # P(drop) ~= p
    scale = 1.0 / (1.0 - p)
    seed_arr = jnp.asarray([seed], dtype=jnp.int32)
    kernel = functools.partial(_pe_add_dropout_kernel, batch=B,
                               keep_threshold=keep_threshold, scale=scale)
    out = pl.pallas_call(
        kernel,
        out_shape=out_shape,
        grid_spec=pltpu.PrefetchScalarGridSpec(
            num_scalar_prefetch=1,
            grid=grid,
            in_specs=[pl.BlockSpec(x_block, x_idx_t),
                      pl.BlockSpec(pe_block, pe_idx_t)],
            out_specs=pl.BlockSpec(x_block, x_idx_t),
        ),
        compiler_params=cparams,
        cost_estimate=cost,
    )(seed_arr, x_in, pe_s)
    return out.reshape(S, B, D) if flatten else out


# ----------------------------------------------------------------------------
# Demo / correctness check
# ----------------------------------------------------------------------------
if __name__ == "__main__":
    # ---- Case 1: small batch (B < 8) -> flattened sublane-dense path -------
    SEQ, BATCH, NUM_INPUT = 8, 2, 32
    MAX_LEN = 64  # small max_len is enough for the demo (module default is 5000)

    x = jax.random.normal(jax.random.PRNGKey(0), (SEQ, BATCH, NUM_INPUT),
                          dtype=jnp.float32)
    pe = make_positional_encoding(NUM_INPUT, max_len=MAX_LEN)
    ref = x + pe[:SEQ, :]                                  # torch forward, eval mode

    out = jax.block_until_ready(
        positional_encoding_forward(x, pe, p=0.1, training=False))
    assert out.shape == (SEQ, BATCH, NUM_INPUT)
    assert out.dtype == x.dtype
    assert jnp.allclose(out, ref, atol=1e-6, rtol=1e-6), "eval (small-B) mismatch"

    # Training mode: kept elements must equal ref * 1/(1-p), dropped are 0.
    p_drop = 0.1
    out_tr = jax.block_until_ready(
        positional_encoding_forward(x, pe, p=p_drop, training=True, seed=1234))
    assert out_tr.shape == (SEQ, BATCH, NUM_INPUT)
    # Smoke-test mask only: a kept value that is exactly 0 would be misclassified
    # (probability ~0 with Gaussian inputs).
    keep_mask = out_tr != 0
    scaled_ref = ref * (1.0 / (1.0 - p_drop))
    assert jnp.allclose(jnp.where(keep_mask, out_tr, 0.0),
                        jnp.where(keep_mask, scaled_ref, 0.0),
                        atol=1e-5, rtol=1e-5), "dropout kept-value mismatch"
    n_drop = int(jnp.sum(~keep_mask))
    assert 0 < n_drop < out_tr.size, "dropout mask degenerate"

    # ---- Case 2: batch >= 8 -> contiguous (ts, B, D) blocks, 2-step grid ---
    S2, B2, D2 = 16, 8, 32
    x2 = jax.random.normal(jax.random.PRNGKey(1), (S2, B2, D2), dtype=jnp.float32)
    pe2 = make_positional_encoding(D2, max_len=MAX_LEN)
    ref2 = x2 + pe2[:S2, :]
    out2 = jax.block_until_ready(
        positional_encoding_forward(x2, pe2, p=0.1, training=False))
    assert jnp.allclose(out2, ref2, atol=1e-6, rtol=1e-6), "eval (batched) mismatch"

    print("KERNEL_OK")
</pallas_src>

<mosaic_0001>
module attributes {stable_mosaic.version = 11 : i64} {
  func.func @_pe_add_kernel(%arg0: i32, %arg1: memref<16x32xf32, #tpu.memory_space<vmem>>, %arg2: memref<8x32xf32, #tpu.memory_space<vmem>>, %arg3: memref<16x32xf32, #tpu.memory_space<vmem>>) attributes {dimension_semantics = [#tpu.dimension_semantics<parallel>], iteration_bounds = array<i64: 1>, scalar_prefetch = 0 : i64, scratch_operands = 0 : i64, tpu.core_type = #tpu.core_type<tc>, window_params = [{transform_indices = @transform_0, window_bounds = array<i64: 16, 32>}, {transform_indices = @transform_1, window_bounds = array<i64: 8, 32>}, {transform_indices = @transform_2, window_bounds = array<i64: 16, 32>}]} {
    %c0 = arith.constant 0 : index
    %c0_0 = arith.constant 0 : index
    %0 = vector.load %arg2[%c0, %c0_0] : memref<8x32xf32, #tpu.memory_space<vmem>>, vector<8x32xf32>
    %c0_1 = arith.constant 0 : index
    %c0_2 = arith.constant 0 : index
    %1 = tpu.strided_load %arg1[%c0_1, %c0_2] {strides = array<i32: 2, 1>} : memref<16x32xf32, #tpu.memory_space<vmem>>, vector<8x32xf32>
    %2 = arith.addf %1, %0 : vector<8x32xf32>
    %c0_3 = arith.constant 0 : index
    %c0_4 = arith.constant 0 : index
    %3 = tpu.strided_load %arg3[%c0_3, %c0_4] {strides = array<i32: 2, 1>} : memref<16x32xf32, #tpu.memory_space<vmem>>, vector<8x32xf32>
    tpu.strided_store %arg3[%c0_3, %c0_4], %2 {strides = array<i32: 2, 1>} : memref<16x32xf32, #tpu.memory_space<vmem>>, vector<8x32xf32>
    %c1 = arith.constant 1 : index
    %c0_5 = arith.constant 0 : index
    %4 = tpu.strided_load %arg1[%c1, %c0_5] {strides = array<i32: 2, 1>} : memref<16x32xf32, #tpu.memory_space<vmem>>, vector<8x32xf32>
    %5 = arith.addf %4, %0 : vector<8x32xf32>
    %c1_6 = arith.constant 1 : index
    %c0_7 = arith.constant 0 : index
    %6 = tpu.strided_load %arg3[%c1_6, %c0_7] {strides = array<i32: 2, 1>} : memref<16x32xf32, #tpu.memory_space<vmem>>, vector<8x32xf32>
    tpu.strided_store %arg3[%c1_6, %c0_7], %5 {strides = array<i32: 2, 1>} : memref<16x32xf32, #tpu.memory_space<vmem>>, vector<8x32xf32>
    return
  }
  func.func @transform_0(%arg0: i32) -> (i32, i32) {
    %c0_i32 = arith.constant 0 : i32
    %c0_i32_0 = arith.constant 0 : i32
    return %arg0, %c0_i32 : i32, i32
  }
  func.func @transform_1(%arg0: i32) -> (i32, i32) {
    %c0_i32 = arith.constant 0 : i32
    %c0_i32_0 = arith.constant 0 : i32
    return %arg0, %c0_i32 : i32, i32
  }
  func.func @transform_2(%arg0: i32) -> (i32, i32) {
    %c0_i32 = arith.constant 0 : i32
    %c0_i32_0 = arith.constant 0 : i32
    return %arg0, %c0_i32 : i32, i32
  }
}

</mosaic_0001>

<bundles_post_ra>
// kernel: tpu_custom_call.1
= control target key start
LH: loop header
LB: loop body
LE: loop exit
PB: predicated region body
PF: predicated region fallthrough
CT: control target
= control target key end

     0   :  { %7 = vsyncpa [#allocation3], 0  ;;  %s204_s0 = inlined_call_operand.hbm [shape: f32[16,32], index: 0, kind: input, shape index: {}]   ;;  %s205_s1 = inlined_call_operand.hbm [shape: f32[8,32], index: 1, kind: input, shape index: {}]   ;;  %s206_s2 = inlined_call_operand.hbm [shape: f32[16,32], index: 2, kind: output, shape index: {}]  }
   0x1   :  { %8 = vsyncpa [#allocation6], 0 }
   0x2   :  { %9 = vsyncpa [#allocation4], 0  ;;  %s142_s9 = smov [#allocation2]   ;;  %s70_s13 = scalar_lea.hbm %s204_s0, 256 }
   0x3   :  { %s15_s10 = sshll.u32 %s142_s9, 4  ;;  %p71_p0 = scmp.ne.s32.totalorder %s204_s0, %s70_s13  ;;  %s16_s10 = int_to_ptr.vmem [resolvable:$true] %s15_s10 }
   0x4   :  { %p74_p1 = scmp.lt.u32.totalorder %s70_s13, %s204_s0 }
   0x6   :  { %p76_p2 = pnand %p74_p1, %p71_p0 }
   0x8   :  { %79 = shalt.err (!%p76_p2)
}
   0x9   :  { %s80_s18 = scalar_lea.vmem %s16_s10, 256  ;;  %p85_p4 = scmp.lt.s32.totalorder %s16_s10, %s16_s10 }
   0xa   :  { %p81_p3 = scmp.ne.s32.totalorder %s16_s10, %s80_s18  ;;  %p86_p5 = scmp.lt.s32.totalorder %s80_s18, %s80_s18 }
   0xc   :  { %p87_p6 = por %p86_p5, %p85_p4 }
   0xe   :  { %p88_p7 = pnand %p87_p6, %p81_p3 }
  0x10   :  { %91 = shalt.err (!%p88_p7)
}
  0x11   :  { %s143_s19 = smov 128   ;;  %s144_s20 = smov 8  }
  0x12   :  { %21 = dma.hbm_to_vmem [thread:$0]  %s204_s0, 256, %s16_s10, [#allocation3], %s143_s19, %s143_s19, %s144_s20  }
  0x13   :  { %s145_s23 = smov [#allocation5]   ;;  %s92_s27 = scalar_lea.hbm %s205_s1, 128 }
  0x14   :  { %s28_s24 = sshll.u32 %s145_s23, 4  ;;  %p93_p8 = scmp.ne.s32.totalorder %s205_s1, %s92_s27  ;;  %s29_s24 = int_to_ptr.vmem [resolvable:$true] %s28_s24 }
  0x15   :  { %p96_p9 = scmp.lt.u32.totalorder %s92_s27, %s205_s1 }
  0x17   :  { %p98_p10 = pnand %p96_p9, %p93_p8 }
  0x19   :  { %101 = shalt.err (!%p98_p10)
}
  0x1a   :  { %s102_s4 = scalar_lea.vmem %s29_s24, 128  ;;  %p107_p12 = scmp.lt.s32.totalorder %s29_s24, %s29_s24 }
  0x1b   :  { %p103_p11 = scmp.ne.s32.totalorder %s29_s24, %s102_s4  ;;  %p108_p13 = scmp.lt.s32.totalorder %s102_s4, %s102_s4 }
  0x1d   :  { %p109_p0 = por %p108_p13, %p107_p12 }
  0x1f   :  { %p110_p1 = pnand %p109_p0, %p103_p11 }
  0x21   :  { %113 = shalt.err (!%p110_p1)
}
  0x22   :  { %31 = dma.hbm_to_vmem [thread:$0]  %s205_s1, 128, %s29_s24, [#allocation6]  }
  0x23   :  { %136 = dma.done.wait [#allocation3], 256  }
  0x24   :  { %137 = vsyncadd [#allocation3], 4294967040 }
  0x25   :  { %138 = dma.done.wait [#allocation6], 128  }
  0x26   :  { %139 = vsyncadd [#allocation6], 4294967168  ;;  %s146_s6 = smov [#allocation7]   ;;  %v38_v0 = vld [vmem:[#allocation5] sm:$0xff]  ;;  %v39_v1 = vld [vmem:[#allocation2] ss:$2 sm:$0xff] }
  0x27   :  { %s52_s7 = sshll.u32 %s146_s6, 4  ;;  %v43_v2 = vld [vmem:[#allocation2 + $0x1] ss:$2 sm:$0xff]  ;;  %v40_v3 = vadd.f32 %v39_v1, %v38_v0  ;;  %s53_s7 = int_to_ptr.vmem [resolvable:$true] %s52_s7 }
  0x28   :  { %v44_v4 = vadd.f32 %v43_v2, %v38_v0  ;;  %s114_s8 = scalar_lea.vmem %s53_s7, 256  ;;  %p119_p3 = scmp.lt.s32.totalorder %s53_s7, %s53_s7 }
  0x29   :  { %41 = vst [vmem:[#allocation7] ss:$2 sm:$0xff] %v40_v3  ;;  %p115_p2 = scmp.ne.s32.totalorder %s53_s7, %s114_s8  ;;  %p120_p4 = scmp.lt.s32.totalorder %s114_s8, %s114_s8 }
  0x2a   :  { %46 = vst [vmem:[#allocation7 + $0x1] ss:$2 sm:$0xff] %v44_v4 }
  0x2b   :  { %p121_p5 = por %p120_p4, %p119_p3 }
  0x2d   :  { %p122_p6 = pnand %p121_p5, %p115_p2 }
  0x2f   :  { %125 = shalt.err (!%p122_p6)
}
  0x30   :  { %s126_s10 = scalar_lea.hbm %s206_s2, 256 }
  0x31   :  { %p127_p7 = scmp.ne.s32.totalorder %s206_s2, %s126_s10  ;;  %p130_p8 = scmp.lt.u32.totalorder %s126_s10, %s206_s2 }
  0x33   :  { %p132_p9 = pnand %p130_p8, %p127_p7 }
  0x35   :  { %135 = shalt.err (!%p132_p9)
}
  0x36   :  { %58 = dma.vmem_to_hbm [thread:$0]  %s53_s7, 256, %s206_s2, [#allocation4], %s143_s19, %s143_s19, %s144_s20  }
  0x37   :  { %140 = dma.done.wait [#allocation4], 256  }
  0x38   :  { %141 = vsyncadd [#allocation4], 4294967040 }
  0x39   :  { %62 = vsyncpa [#allocation3], 1 }
  0x3a   :  { %63 = vsyncpa [#allocation6], 1 }
  0x3b   :  { %64 = vsyncpa [#allocation4], 1 }

</bundles_post_ra>
